<compile_context>
chip_gen: v6e
topology: v6e:2x2x1
jax: 0.10.0
libtpu: 0.0.40
codegen_flags: <defaults>
</compile_context>

<pallas_src>
import functools
import math

import jax
import jax.numpy as jnp
from jax.experimental import pallas as pl
from jax.experimental.pallas import tpu as pltpu


def _round_up(x, m):
    return (x + m - 1) // m * m


# ----------------------------------------------------------------------------
# Pallas kernel: feature-model stand-in + value MLP, all three linears + ReLUs
# fused into one MXU kernel operating on a [B_TILE, *] batch tile.
# ----------------------------------------------------------------------------
def critic_kernel(x_ref, w1_ref, b1_ref, w2_ref, b2_ref, w3t_ref, b3_ref, o_ref):
    x = x_ref[...]                                                   # [Bt, D0p] bf16
    h = jnp.dot(x, w1_ref[...], preferred_element_type=jnp.float32) + b1_ref[...]
    h = jnp.maximum(h, 0.0)                                          # feature model ReLU
    h = jnp.dot(h.astype(jnp.bfloat16), w2_ref[...],
                preferred_element_type=jnp.float32) + b2_ref[...]
    h = jnp.maximum(h, 0.0)                                          # hidden ReLU
    # Final Linear(d2 -> 1) as an NT matmul against the transposed weight
    # (padded to 8 sublane rows): result is a lane-major (8, Bt) slab, so the
    # store is lane-dense and only ~32 B/row go back to HBM (row 0 is real).
    v = jax.lax.dot_general(w3t_ref[...], h.astype(jnp.bfloat16),
                            (((1,), (1,)), ((), ())),
                            preferred_element_type=jnp.float32)       # [8, Bt]
    v = jnp.maximum(v + b3_ref[...], 0.0)                            # ReLU after last Linear (as in spec)
    o_ref[...] = v


def critic_forward(x_padded, params, *, b_tile):
    """x_padded: [Np, D0p] bf16 (Np % b_tile == 0) -> [8, Np] f32 (row 0 holds the values)."""
    (w1, b1), (w2, b2), (w3t, b3) = params
    n_pad, d0p = x_padded.shape
    n_tiles = n_pad // b_tile

    const = lambda a: pl.BlockSpec(a.shape, lambda i: (0, 0))  # VMEM-resident weights/biases

    return pl.pallas_call(
        critic_kernel,
        out_shape=jax.ShapeDtypeStruct((8, n_pad), jnp.float32),
        grid=(n_tiles,),
        in_specs=[
            pl.BlockSpec((b_tile, d0p), lambda i: (i, 0)),
            const(w1), const(b1),
            const(w2), const(b2),
            const(w3t), const(b3),
        ],
        out_specs=pl.BlockSpec((8, b_tile), lambda i: (0, i)),
        compiler_params=pltpu.CompilerParams(
            dimension_semantics=("parallel",)),
    )(x_padded, w1, b1, w2, b2, w3t, b3)


def _forward_impl(params, inputs, *, d0p, b_tile):
    """reshape + pad + fused kernel + slice; meant to run under jax.jit."""
    n = inputs.shape[0]
    x = inputs.reshape(n, -1).astype(jnp.bfloat16)
    n_tiles = -(-n // b_tile)
    if n_tiles > 1 and n_tiles % 2 == 1:
        n_tiles += 1                      # even grid -> balanced split across v7x's 2 TCs
    n_pad = n_tiles * b_tile
    x = jnp.pad(x, ((0, n_pad - n), (0, d0p - x.shape[1])))
    out = critic_forward(x, params, b_tile=b_tile)
    return out[0, :n]                     # squeeze(1) + drop batch padding


# ----------------------------------------------------------------------------
# Wrapper mirroring Critic: feature model (stand-in) -> hidden dims -> 1.
# ----------------------------------------------------------------------------
class CriticPallas:
    def __init__(self, config, key, in_shape):
        self.batch_size = config["batch_size"]          # API parity (single gridded call used instead)
        self.b_tile = int(config.get("b_tile", 512))    # large, lane/sublane aligned batch tile

        in_dim = math.prod(in_shape)
        self.in_dim = in_dim
        self.d0p = _round_up(in_dim, 128)               # lane-dense input slab

        # Logical layer dims exactly as the module builds them:
        #   feature stand-in: in_dim -> num_features, then
        #   hidden_dims = [num_features] + config['hidden_dims'] + [1]
        logical = [in_dim, config["num_features"]] + config["hidden_dims"] + [1]
        assert len(logical) == 4, "this script fuses exactly 3 linear layers"
        d1, d2 = logical[1], logical[2]

        # Deterministic PyTorch-like Linear init: U(-1/sqrt(fan_in), 1/sqrt(fan_in)),
        # computed at the LOGICAL fan_in, then zero-padded / transposed and cast.
        def linear_init(k, fan_in, fan_out):
            kw, kb = jax.random.split(k)
            bound = 1.0 / math.sqrt(float(fan_in))
            w = jax.random.uniform(kw, (fan_in, fan_out), jnp.float32, -bound, bound)
            b = jax.random.uniform(kb, (1, fan_out), jnp.float32, -bound, bound)
            return w, b

        k1, k2, k3 = jax.random.split(key, 3)
        w1, b1 = linear_init(k1, in_dim, d1)
        w1 = jnp.pad(w1, ((0, self.d0p - in_dim), (0, 0)))   # padded input lanes contribute 0
        w2, b2 = linear_init(k2, d1, d2)
        w3, b3 = linear_init(k3, d2, 1)
        # Final layer stored transposed and padded to 8 sublane rows (rows 1..7 zero):
        # the kernel's NT matmul then produces a lane-major (8, b_tile) value slab.
        w3t = jnp.pad(w3.T, ((0, 7), (0, 0)))                # (8, d2)
        b3p = jnp.pad(b3.T, ((0, 7), (0, 0)))                # (8, 1)

        self.params = (
            (w1.astype(jnp.bfloat16), b1.astype(jnp.float32)),
            (w2.astype(jnp.bfloat16), b2.astype(jnp.float32)),
            (w3t.astype(jnp.bfloat16), b3p.astype(jnp.float32)),
        )
        self._fwd = jax.jit(functools.partial(_forward_impl, d0p=self.d0p, b_tile=self.b_tile))

    def forward(self, inputs):
        """inputs: [N, ...] -> values [N] float32 (matches Critic.forward's concatenated, squeezed output)."""
        return self._fwd(self.params, inputs)


# ----------------------------------------------------------------------------
# Pure-JAX reference (same dtypes / math) for a correctness sanity check.
# ----------------------------------------------------------------------------
def _reference_forward(params, inputs):
    (w1, b1), (w2, b2), (w3t, b3) = params
    n = inputs.shape[0]
    x = inputs.reshape(n, -1).astype(jnp.bfloat16)
    x = jnp.pad(x, ((0, 0), (0, w1.shape[0] - x.shape[1])))
    h = jnp.maximum(jnp.dot(x, w1, preferred_element_type=jnp.float32) + b1, 0.0)
    h = jnp.maximum(jnp.dot(h.astype(jnp.bfloat16), w2,
                            preferred_element_type=jnp.float32) + b2, 0.0)
    v = jnp.dot(h.astype(jnp.bfloat16), w3t[0:1].T,
                preferred_element_type=jnp.float32) + b3[0, 0]
    return jnp.maximum(v, 0.0)[:, 0]


if __name__ == "__main__":
    config = {
        "batch_size": 128,       # kept for API parity with the PyTorch module
        "num_features": 32,
        "hidden_dims": [64],
        "b_tile": 512,
    }

    key = jax.random.PRNGKey(0)
    key, k_params, k_inputs = jax.random.split(key, 3)

    # Stand-in observations for the external feature model: [N, 3, 6, 7] planes.
    N, C, R, COLS = 600, 3, 6, 7
    inputs = jax.random.randint(k_inputs, (N, C, R, COLS), 0, 2).astype(jnp.float32)

    critic = CriticPallas(config, k_params, in_shape=(C, R, COLS))
    values = jax.block_until_ready(critic.forward(inputs))

    assert values.shape == (N,)
    assert values.dtype == jnp.float32

    ref = jax.block_until_ready(_reference_forward(critic.params, inputs))
    max_err = float(jnp.max(jnp.abs(values - ref)))
    assert max_err < 5e-2, f"max |kernel - ref| = {max_err}"

    print("KERNEL_OK")
</pallas_src>

<mosaic_0001>
module attributes {stable_mosaic.version = 11 : i64} {
  func.func @critic_kernel(%arg0: i32, %arg1: memref<512x128xbf16, #tpu.memory_space<vmem>>, %arg2: memref<128x32xbf16, #tpu.memory_space<vmem>>, %arg3: memref<1x32xf32, #tpu.memory_space<vmem>>, %arg4: memref<32x64xbf16, #tpu.memory_space<vmem>>, %arg5: memref<1x64xf32, #tpu.memory_space<vmem>>, %arg6: memref<8x64xbf16, #tpu.memory_space<vmem>>, %arg7: memref<8x1xf32, #tpu.memory_space<vmem>>, %arg8: memref<8x512xf32, #tpu.memory_space<vmem>>) attributes {dimension_semantics = [#tpu.dimension_semantics<parallel>], iteration_bounds = array<i64: 2>, scalar_prefetch = 0 : i64, scratch_operands = 0 : i64, tpu.core_type = #tpu.core_type<tc>, window_params = [{transform_indices = @transform_0, window_bounds = array<i64: 512, 128>}, {pipeline_mode = #tpu.pipeline_mode<synchronous>, transform_indices = @transform_1, window_bounds = array<i64: 128, 32>}, {pipeline_mode = #tpu.pipeline_mode<synchronous>, transform_indices = @transform_2, window_bounds = array<i64: 1, 32>}, {pipeline_mode = #tpu.pipeline_mode<synchronous>, transform_indices = @transform_3, window_bounds = array<i64: 32, 64>}, {pipeline_mode = #tpu.pipeline_mode<synchronous>, transform_indices = @transform_4, window_bounds = array<i64: 1, 64>}, {pipeline_mode = #tpu.pipeline_mode<synchronous>, transform_indices = @transform_5, window_bounds = array<i64: 8, 64>}, {pipeline_mode = #tpu.pipeline_mode<synchronous>, transform_indices = @transform_6, window_bounds = array<i64: 8, 1>}, {transform_indices = @transform_7, window_bounds = array<i64: 8, 512>}]} {
    %c0 = arith.constant 0 : index
    %c0_0 = arith.constant 0 : index
    %0 = vector.load %arg1[%c0, %c0_0] : memref<512x128xbf16, #tpu.memory_space<vmem>>, vector<512x128xbf16>
    %c0_1 = arith.constant 0 : index
    %c0_2 = arith.constant 0 : index
    %1 = vector.load %arg2[%c0_1, %c0_2] : memref<128x32xbf16, #tpu.memory_space<vmem>>, vector<128x32xbf16>
    %cst = arith.constant dense<0.000000e+00> : vector<512x32xf32>
    %2 = tpu.matmul %0, %1, %cst {dimension_numbers = #tpu.dot_dimension_numbers<[1], [0], [0], [1], [0, 0, 1, 1], [], []>} : vector<512x128xbf16>, vector<128x32xbf16>, vector<512x32xf32> -> vector<512x32xf32>
    %c0_3 = arith.constant 0 : index
    %c0_4 = arith.constant 0 : index
    %3 = vector.load %arg3[%c0_3, %c0_4] : memref<1x32xf32, #tpu.memory_space<vmem>>, vector<1x32xf32>
    %4 = vector.broadcast %3 : vector<1x32xf32> to vector<512x32xf32>
    %5 = arith.addf %2, %4 : vector<512x32xf32>
    %cst_5 = arith.constant 0.000000e+00 : f32
    %6 = vector.broadcast %cst_5 : f32 to vector<512x32xf32>
    %7 = arith.maximumf %5, %6 : vector<512x32xf32>
    %8 = arith.truncf %7 : vector<512x32xf32> to vector<512x32xbf16>
    %c0_6 = arith.constant 0 : index
    %c0_7 = arith.constant 0 : index
    %9 = vector.load %arg4[%c0_6, %c0_7] : memref<32x64xbf16, #tpu.memory_space<vmem>>, vector<32x64xbf16>
    %cst_8 = arith.constant dense<0.000000e+00> : vector<512x64xf32>
    %10 = tpu.matmul %8, %9, %cst_8 {dimension_numbers = #tpu.dot_dimension_numbers<[1], [0], [0], [1], [0, 0, 1, 1], [], []>} : vector<512x32xbf16>, vector<32x64xbf16>, vector<512x64xf32> -> vector<512x64xf32>
    %c0_9 = arith.constant 0 : index
    %c0_10 = arith.constant 0 : index
    %11 = vector.load %arg5[%c0_9, %c0_10] : memref<1x64xf32, #tpu.memory_space<vmem>>, vector<1x64xf32>
    %12 = vector.broadcast %11 : vector<1x64xf32> to vector<512x64xf32>
    %13 = arith.addf %10, %12 : vector<512x64xf32>
    %cst_11 = arith.constant 0.000000e+00 : f32
    %14 = vector.broadcast %cst_11 : f32 to vector<512x64xf32>
    %15 = arith.maximumf %13, %14 : vector<512x64xf32>
    %c0_12 = arith.constant 0 : index
    %c0_13 = arith.constant 0 : index
    %16 = vector.load %arg6[%c0_12, %c0_13] : memref<8x64xbf16, #tpu.memory_space<vmem>>, vector<8x64xbf16>
    %17 = arith.truncf %15 : vector<512x64xf32> to vector<512x64xbf16>
    %cst_14 = arith.constant dense<0.000000e+00> : vector<8x512xf32>
    %18 = tpu.matmul %16, %17, %cst_14 {dimension_numbers = #tpu.dot_dimension_numbers<[1], [1], [0], [0], [0, 0, 1, 0], [], []>} : vector<8x64xbf16>, vector<512x64xbf16>, vector<8x512xf32> -> vector<8x512xf32>
    %c0_15 = arith.constant 0 : index
    %c0_16 = arith.constant 0 : index
    %19 = vector.load %arg7[%c0_15, %c0_16] : memref<8x1xf32, #tpu.memory_space<vmem>>, vector<8x1xf32>
    %20 = vector.broadcast %19 : vector<8x1xf32> to vector<8x512xf32>
    %21 = arith.addf %18, %20 : vector<8x512xf32>
    %cst_17 = arith.constant 0.000000e+00 : f32
    %22 = vector.broadcast %cst_17 : f32 to vector<8x512xf32>
    %23 = arith.maximumf %21, %22 : vector<8x512xf32>
    %c0_18 = arith.constant 0 : index
    %c0_19 = arith.constant 0 : index
    %24 = vector.load %arg8[%c0_18, %c0_19] : memref<8x512xf32, #tpu.memory_space<vmem>>, vector<8x512xf32>
    tpu.vector_store %arg8[%c0_18, %c0_19], %23 {strides = array<i32>} : memref<8x512xf32, #tpu.memory_space<vmem>>, vector<8x512xf32>,
    return
  }
  func.func @transform_0(%arg0: i32) -> (i32, i32) {
    %c0_i32 = arith.constant 0 : i32
    %c0_i32_0 = arith.constant 0 : i32
    return %arg0, %c0_i32 : i32, i32
  }
  func.func @transform_1(%arg0: i32) -> (i32, i32) {
    %c0_i32 = arith.constant 0 : i32
    %c0_i32_0 = arith.constant 0 : i32
    %c0_i32_1 = arith.constant 0 : i32
    return %c0_i32, %c0_i32_0 : i32, i32
  }
  func.func @transform_2(%arg0: i32) -> (i32, i32) {
    %c0_i32 = arith.constant 0 : i32
    %c0_i32_0 = arith.constant 0 : i32
    %c0_i32_1 = arith.constant 0 : i32
    return %c0_i32, %c0_i32_0 : i32, i32
  }
  func.func @transform_3(%arg0: i32) -> (i32, i32) {
    %c0_i32 = arith.constant 0 : i32
    %c0_i32_0 = arith.constant 0 : i32
    %c0_i32_1 = arith.constant 0 : i32
    return %c0_i32, %c0_i32_0 : i32, i32
  }
  func.func @transform_4(%arg0: i32) -> (i32, i32) {
    %c0_i32 = arith.constant 0 : i32
    %c0_i32_0 = arith.constant 0 : i32
    %c0_i32_1 = arith.constant 0 : i32
    return %c0_i32, %c0_i32_0 : i32, i32
  }
  func.func @transform_5(%arg0: i32) -> (i32, i32) {
    %c0_i32 = arith.constant 0 : i32
    %c0_i32_0 = arith.constant 0 : i32
    %c0_i32_1 = arith.constant 0 : i32
    return %c0_i32, %c0_i32_0 : i32, i32
  }
  func.func @transform_6(%arg0: i32) -> (i32, i32) {
    %c0_i32 = arith.constant 0 : i32
    %c0_i32_0 = arith.constant 0 : i32
    %c0_i32_1 = arith.constant 0 : i32
    return %c0_i32, %c0_i32_0 : i32, i32
  }
  func.func @transform_7(%arg0: i32) -> (i32, i32) {
    %c0_i32 = arith.constant 0 : i32
    %c0_i32_0 = arith.constant 0 : i32
    return %c0_i32, %arg0 : i32, i32
  }
}

</mosaic_0001>

<bundles_post_ra>
// kernel: _forward_impl.1
= control target key start
LH: loop header
LB: loop body
LE: loop exit
PB: predicated region body
PF: predicated region fallthrough
CT: control target
= control target key end

     0   :  { %s2217_s24 = smov 0   ;;  %s2604_s0 = inlined_call_operand.vmem [shape: bf16[1024,128], index: 0, kind: input, shape index: {}]   ;;  %s2605_s1 = inlined_call_operand.vmem [shape: bf16[128,32], index: 1, kind: input, shape index: {}]   ;;  %s2606_s2 = inlined_call_operand.vmem [shape: f32[1,32], index: 2, kind: input, shape index: {}]   ;;  %s2607_s3 = inlined_call_operand.vmem [shape: bf16[32,64], index: 3, kind: input, shape index: {}]   ;;  %s2608_s4 = inlined_call_operand.vmem [shape: f32[1,64], index: 4, kind: input, shape index: {}]   ;;  %s2609_s5 = inlined_call_operand.vmem [shape: bf16[8,64], index: 5, kind: input, shape index: {}]   ;;  %s2610_s6 = inlined_call_operand.vmem [shape: f32[8,1], index: 6, kind: input, shape index: {}]   ;;  %s2611_s7 = inlined_call_operand.vmem [shape: f32[8,1024], index: 7, kind: output, shape index: {}]  }
   0x1 LB: > { %s1753_s25 = sadd.s32 4294967295, %s2174_s24   ;;  %p1757_p0 = scmp.ge.s32.totalorder %s2174_s24, 1  ;;  %s2174_s24 = sphi %s2217_s24, %s17_s24  }
   0x2   : > { %p238_p1 = scmp.lt.s32.totalorder %s2174_s24, 3 }
   0x4   : > { %p239_p2 = pnand %p1757_p0, %p238_p1 }
   0x5   : > { %s1758_s28 = sshll.u32 (!%p239_p2), %s1753_s25, 6  ;;  %s1760_s15 = sshll.u32 (!%p239_p2), %s1753_s25, 2 }
   0x6   : > { %242 = sbr.rel (%p239_p2) target bundleno = 837 (0x345), region = 48  ;;  %p271_p3 = scmp.lt.s32.totalorder (!%p239_p2), %s1758_s28, 127 }
   0x7   : > { %p277_p4 = scmp.lt.s32.totalorder (!%p239_p2), %s1760_s15, 7 }
   0xb   : > { %v2126_v0 = vld [vmem:[%s2605_s1 + $0x38] sm:$0xff]   ;;  %v2127_v1 = vld [vmem:[%s2605_s1 + $0x30] sm:$0xff]   ;;  %s2613_s28 = smov (!%p271_p3, %s1758_s28), 127  ;;  %v2128_v2 = vld [vmem:[%s2605_s1 + $0x28] sm:$0xff]   ;;  %vm1018_vm0 = vcmask 261120   ;;  %vm1507_vm1 = vcmask 523264  }
   0xc   : > { %1952 = vmatprep.subr.bf16.mxu0 %v2126_v0  ;;  %s1759_s10 = sshll.u32 %s2613_s28, 2  ;;  %v2129_v3 = vld [vmem:[%s2605_s1 + $0x20] sm:$0xff]   ;;  %v2130_v5 = vld [vmem:[%s2605_s1 + $0x18] sm:$0xff]   ;;  %v2131_v6 = vld [vmem:[%s2605_s1 + $0x10] sm:$0xff]   ;;  %s2615_s15 = smov (!%p277_p4, %s1760_s15), 7 }
   0xd   : > { %1953 = vmatpush3.bf16.msra.mxu0 %v2126_v0  ;;  %s2239_s13 = scalar_lea.vmem %s2604_s0, %s1759_s10  ;;  %v2132_v7 = vld [vmem:[%s2605_s1 + $0x8] sm:$0xff]   ;;  %v2133_v8 = vld [vmem:[%s2605_s1] sm:$0xff]   ;;  %s1761_s16 = sshll.u32 %s2615_s15, 3 }
   0xe   : > { %1954 = vmatprep.subr.bf16.mxu0 %v2127_v1  ;;  %v2134_v4 = vld [vmem:[%s2239_s13] sm:$0xff]   ;;  %v2135_v9 = vld [vmem:[%s2239_s13 + $0x8] sm:$0xff]   ;;  %v2136_v10 = vld [vmem:[%s2239_s13 + $0x10] sm:$0xff]   ;;  %s280_s19 = scalar_lea.vmem %s2611_s7, %s1761_s16 }
   0xf   : > { %1968 = vmatprep.mubr.bf16.mxu0 %v2134_v4  ;;  %v2137_v11 = vld [vmem:[%s2239_s13 + $0x18] sm:$0xff]   ;;  %v2138_v12 = vld [vmem:[%s2239_s13 + $0x20] sm:$0xff]   ;;  %v2139_v13 = vld [vmem:[%s2239_s13 + $0x28] sm:$0xff]  }
  0x10   : > { %v2140_v14 = vld [vmem:[%s2239_s13 + $0x30] sm:$0xff]   ;;  %v2141_v15 = vld [vmem:[%s2239_s13 + $0x38] sm:$0xff]   ;;  %v2142_v16 = vld [vmem:[%s2239_s13 + $0x40] sm:$0xff]  }
  0x11   : > { %1955 = vmatpush3.bf16.msra.mxu0 %v2127_v1  ;;  %v2143_v17 = vld [vmem:[%s2239_s13 + $0x48] sm:$0xff]   ;;  %v2144_v18 = vld [vmem:[%s2239_s13 + $0x50] sm:$0xff]   ;;  %v2145_v19 = vld [vmem:[%s2239_s13 + $0x58] sm:$0xff]  }
  0x12   : > { %1956 = vmatprep.subr.bf16.mxu0 %v2128_v2  ;;  %v2146_v20 = vld [vmem:[%s2239_s13 + $0x60] sm:$0xff]   ;;  %v2147_v21 = vld [vmem:[%s2239_s13 + $0x68] sm:$0xff]   ;;  %v2148_v22 = vld [vmem:[%s2239_s13 + $0x70] sm:$0xff]  }
  0x13   : > { %v2149_v23 = vld [vmem:[%s2239_s13 + $0x78] sm:$0xff]   ;;  %v2150_v24 = vld [vmem:[%s2239_s13 + $0x80] sm:$0xff]   ;;  %v2151_v25 = vld [vmem:[%s2239_s13 + $0x88] sm:$0xff]  }
  0x14   : > { %v2152_v26 = vld [vmem:[%s2239_s13 + $0x90] sm:$0xff]   ;;  %v2153_v27 = vld [vmem:[%s2239_s13 + $0x98] sm:$0xff]   ;;  %v2166_v28 = vld [vmem:[%s2607_s3 + $0x8] sm:$0xff]  }
  0x15   : > { %1957 = vmatpush3.bf16.msra.mxu0 %v2128_v2  ;;  %v2154_v29 = vld [vmem:[%s2239_s13 + $0xa0] sm:$0xff]   ;;  %2032 = vmatprep.subr.bf16.mxu1 %v2166_v28  ;;  %v2155_v31 = vld [vmem:[%s2239_s13 + $0xa8] sm:$0xff]   ;;  %v2156_v32 = vld [vmem:[%s2239_s13 + $0xb0] sm:$0xff]  }
  0x16   : > { %1958 = vmatprep.subr.bf16.mxu0 %v2129_v3  ;;  %2033 = vmatpush3.bf16.msra.mxu1 %v2166_v28  ;;  %v2167_v30 = vld [vmem:[%s2607_s3] sm:$0xff]   ;;  %v2157_v33 = vld [vmem:[%s2239_s13 + $0xb8] sm:$0xff]   ;;  %v2159_v35 = vld [vmem:[%s2239_s13 + $0xc8] sm:$0xff]  }
  0x17   : > { %2034 = vmatprep.subr.bf16.mxu1 %v2167_v30  ;;  %v2158_v34 = vld [vmem:[%s2239_s13 + $0xc0] sm:$0xff]   ;;  %v2160_v36 = vld [vmem:[%s2239_s13 + $0xd0] sm:$0xff]   ;;  %v2161_v37 = vld [vmem:[%s2239_s13 + $0xd8] sm:$0xff]  }
  0x18   : > { %v2162_v38 = vld [vmem:[%s2239_s13 + $0xe0] sm:$0xff]   ;;  %v2163_v39 = vld [vmem:[%s2239_s13 + $0xe8] sm:$0xff]   ;;  %v2164_v40 = vld [vmem:[%s2239_s13 + $0xf0] sm:$0xff]  }
  0x19   : > { %1959 = vmatpush3.bf16.msra.mxu0 %v2129_v3  ;;  %v2165_v41 = vld [vmem:[%s2239_s13 + $0xf8] sm:$0xff]   ;;  %v2297_v44 = vld [vmem:[%s2606_s2] ss:$0 sm:$0xff] }
  0x1a   : > { %1960 = vmatprep.subr.bf16.mxu0 %v2130_v5  ;;  %2035 = vmatpush3.bf16.msra.mxu1 %v2167_v30 }
  0x1d   : > { %1961 = vmatpush3.bf16.msra.mxu0 %v2130_v5 }
  0x1e   : > { %1962 = vmatprep.subr.bf16.mxu0 %v2131_v6 }
  0x21   : > { %1963 = vmatpush3.bf16.msra.mxu0 %v2131_v6 }
  0x22   : > { %1964 = vmatprep.subr.bf16.mxu0 %v2132_v7 }
  0x25   : > { %1965 = vmatpush3.bf16.msra.mxu0 %v2132_v7 }
  0x26   : > { %1966 = vmatprep.subr.bf16.mxu0 %v2133_v8 }
  0x29   : > { %1967 = vmatpush3.bf16.msra.mxu0 %v2133_v8 }
  0x2c   : > { %1969 = vmatmul.mubr.bf16.vlgmr.msra.gmra.mxu0 %v2135_v9 }
  0x2d   : > { %1972 = vmatprep.mubr.bf16.mxu0 %v2136_v10 }
  0x34   : > { %1973 = vmatmul.mubr.bf16.gmra.mxu0 %v2137_v11 }
  0x35   : > { %1976 = vmatprep.mubr.bf16.mxu0 %v2138_v12 }
  0x3c   : > { %1977 = vmatmul.mubr.bf16.gmra.mxu0 %v2139_v13 }
  0x3d   : > { %1980 = vmatprep.mubr.bf16.mxu0 %v2140_v14 }
  0x44   : > { %1981 = vmatmul.mubr.bf16.gmra.mxu0 %v2141_v15 }
  0x45   : > { %1984 = vmatprep.mubr.bf16.mxu0 %v2142_v16 }
  0x4c   : > { %1985 = vmatmul.mubr.bf16.gmra.mxu0 %v2143_v17 }
  0x4d   : > { %1988 = vmatprep.mubr.bf16.mxu0 %v2144_v18 }
  0x54   : > { %1989 = vmatmul.mubr.bf16.gmra.mxu0 %v2145_v19 }
  0x55   : > { %1992 = vmatprep.mubr.bf16.mxu0 %v2146_v20 }
  0x5c   : > { %1993 = vmatmul.mubr.bf16.gmra.mxu0 %v2147_v21 }
  0x5d   : > { %1996 = vmatprep.mubr.bf16.mxu0 %v2148_v22 }
  0x64   : > { %1997 = vmatmul.mubr.bf16.gmra.mxu0 %v2149_v23 }
  0x65   : > { %2000 = vmatprep.mubr.bf16.mxu0 %v2150_v24 }
  0x6c   : > { %2001 = vmatmul.mubr.bf16.gmra.mxu0 %v2151_v25 }
  0x6d   : > { %2004 = vmatprep.mubr.bf16.mxu0 %v2152_v26 }
  0x74   : > { %2005 = vmatmul.mubr.bf16.gmra.mxu0 %v2153_v27 }
  0x75   : > { %2008 = vmatprep.mubr.bf16.mxu0 %v2154_v29 }
  0x7c   : > { %2009 = vmatmul.mubr.bf16.gmra.mxu0 %v2155_v31 }
  0x7d   : > { %2012 = vmatprep.mubr.bf16.mxu0 %v2156_v32 }
  0x84   : > { %2013 = vmatmul.mubr.bf16.gmra.mxu0 %v2157_v33 }
  0x85   : > { %2016 = vmatprep.mubr.bf16.mxu0 %v2158_v34 }
  0x8c   : > { %2017 = vmatmul.mubr.bf16.gmra.mxu0 %v2159_v35 }
  0x8d   : > { %2020 = vmatprep.mubr.bf16.mxu0 %v2160_v36 }
  0x94   : > { %2021 = vmatmul.mubr.bf16.gmra.mxu0 %v2161_v37 }
  0x95   : > { %2024 = vmatprep.mubr.bf16.mxu0 %v2162_v38 }
  0x9c   : > { %2025 = vmatmul.mubr.bf16.gmra.mxu0 %v2163_v39 }
  0x9d   : > { %2028 = vmatprep.mubr.bf16.mxu0 %v2164_v40 }
  0xa4   : > { %2029 = vmatmul.mubr.bf16.gmra.mxu0 %v2165_v41 }
  0xec   : > { %v1970_v42 = vpop.f32.mrf.mxu0 }
  0xed   : > { %v653_v48 = vadd.f32 %v1970_v42, %v2297_v44 }
  0xee   : > { %v644_v43 = vpop.f32.mrf.mxu0 }
  0xef   : > { %v645_v46 = vadd.f32 %v2297_v44, %v644_v43  ;;  %v901_v55 = vmax.f32 %v653_v48, 0.0 }
  0xf0   : > { %v1971_v45 = vpop.f32.mrf.mxu0 }
  0xf1   : > { %v656_v47 = vadd.f32 %v1971_v45, %v2297_v44  ;;  %v899_v53 = vmax.f32 %v645_v46, 0.0 }
  0xf2   : > { %v647_v49 = vpop.f32.mrf.mxu0 }
  0xf3   : > { %v648_v50 = vadd.f32 %v2297_v44, %v647_v49  ;;  %v902_v51 = vmax.f32 %v656_v47, 0.0 }
  0xf4   : > { %v1974_v52 = vpop.f32.mrf.mxu0 }
  0xf5   : > { %v900_v54 = vmax.f32 %v648_v50, 0.0  ;;  %v964_v58 = vpack.c.bf16 %v902_v51, %v901_v55  ;;  %v669_v62 = vadd.f32 %v1974_v52, %v2297_v44 }
  0xf6   : > { %v660_v56 = vpop.f32.mrf.mxu0 }
  0xf7   : > { %v963_v57 = vpack.c.bf16 %v900_v54, %v899_v53  ;;  %v661_v60 = vadd.f32 %v2297_v44, %v660_v56  ;;  %v905_v5 = vmax.f32 %v669_v62, 0.0 }
  0xf8   : > { %v1975_v59 = vpop.f32.mrf.mxu0 }
  0xf9   : > { %v672_v61 = vadd.f32 %v1975_v59, %v2297_v44  ;;  %2036 = vmatprep.mubr.msk.bf16.mxu1 %vm1018_vm0, %v963_v57  ;;  %v903_v3 = vmax.f32 %v661_v60, 0.0 }
  0xfa   : > { %v663_v63 = vpop.f32.mrf.mxu0  ;;  %2037 = vmatmul.mubr.msk.bf16.vlgmr.msra.gmra.mxu1 %vm1018_vm0, %v964_v58 }
  0xfb   : > { %v664_v0 = vadd.f32 %v2297_v44, %v663_v63  ;;  %v906_v1 = vmax.f32 %v672_v61, 0.0 }
  0xfc   : > { %v1978_v2 = vpop.f32.mrf.mxu0 }
  0xfd   : > { %v904_v4 = vmax.f32 %v664_v0, 0.0  ;;  %v966_v8 = vpack.c.bf16 %v906_v1, %v905_v5  ;;  %v685_v12 = vadd.f32 %v1978_v2, %v2297_v44 }
  0xfe   : > { %v676_v6 = vpop.f32.mrf.mxu0 }
  0xff   : > { %v965_v7 = vpack.c.bf16 %v904_v4, %v903_v3  ;;  %v677_v10 = vadd.f32 %v2297_v44, %v676_v6  ;;  %v909_v19 = vmax.f32 %v685_v12, 0.0 }
 0x100   : > { %v1979_v9 = vpop.f32.mrf.mxu0 }
 0x101   : > { %v688_v11 = vadd.f32 %v1979_v9, %v2297_v44  ;;  %2040 = vmatprep.mubr.msk.bf16.mxu1 %vm1018_vm0, %v965_v7  ;;  %v907_v17 = vmax.f32 %v677_v10, 0.0 }
 0x102   : > { %v679_v13 = vpop.f32.mrf.mxu0  ;;  %2041 = vmatmul.mubr.msk.bf16.gmra.mxu1 %vm1018_vm0, %v966_v8 }
 0x103   : > { %v680_v14 = vadd.f32 %v2297_v44, %v679_v13  ;;  %v910_v15 = vmax.f32 %v688_v11, 0.0 }
 0x104   : > { %v1982_v16 = vpop.f32.mrf.mxu0 }
 0x105   : > { %v908_v18 = vmax.f32 %v680_v14, 0.0  ;;  %v968_v22 = vpack.c.bf16 %v910_v15, %v909_v19  ;;  %v701_v26 = vadd.f32 %v1982_v16, %v2297_v44 }
 0x106   : > { %v692_v20 = vpop.f32.mrf.mxu0 }
 0x107   : > { %v967_v21 = vpack.c.bf16 %v908_v18, %v907_v17  ;;  %v693_v24 = vadd.f32 %v2297_v44, %v692_v20  ;;  %v913_v33 = vmax.f32 %v701_v26, 0.0 }
 0x108   : > { %v1983_v23 = vpop.f32.mrf.mxu0 }
 0x109   : > { %v704_v25 = vadd.f32 %v1983_v23, %v2297_v44  ;;  %2044 = vmatprep.mubr.msk.bf16.mxu1 %vm1018_vm0, %v967_v21  ;;  %v911_v31 = vmax.f32 %v693_v24, 0.0 }
 0x10a   : > { %v695_v27 = vpop.f32.mrf.mxu0  ;;  %2045 = vmatmul.mubr.msk.bf16.gmra.mxu1 %vm1018_vm0, %v968_v22 }
 0x10b   : > { %v696_v28 = vadd.f32 %v2297_v44, %v695_v27  ;;  %v914_v29 = vmax.f32 %v704_v25, 0.0 }
 0x10c   : > { %v1986_v30 = vpop.f32.mrf.mxu0 }
 0x10d   : > { %v912_v32 = vmax.f32 %v696_v28, 0.0  ;;  %v970_v36 = vpack.c.bf16 %v914_v29, %v913_v33  ;;  %v717_v40 = vadd.f32 %v1986_v30, %v2297_v44 }
 0x10e   : > { %v708_v34 = vpop.f32.mrf.mxu0 }
 0x10f   : > { %v969_v35 = vpack.c.bf16 %v912_v32, %v911_v31  ;;  %v709_v38 = vadd.f32 %v2297_v44, %v708_v34  ;;  %v917_v48 = vmax.f32 %v717_v40, 0.0 }
 0x110   : > { %v1987_v37 = vpop.f32.mrf.mxu0 }
 0x111   : > { %v720_v39 = vadd.f32 %v1987_v37, %v2297_v44  ;;  %2048 = vmatprep.mubr.msk.bf16.mxu1 %vm1018_vm0, %v969_v35  ;;  %v915_v46 = vmax.f32 %v709_v38, 0.0 }
 0x112   : > { %v711_v41 = vpop.f32.mrf.mxu0  ;;  %2049 = vmatmul.mubr.msk.bf16.gmra.mxu1 %vm1018_vm0, %v970_v36 }
 0x113   : > { %v712_v42 = vadd.f32 %v2297_v44, %v711_v41  ;;  %v918_v43 = vmax.f32 %v720_v39, 0.0 }
 0x114   : > { %v1990_v45 = vpop.f32.mrf.mxu0 }
 0x115   : > { %v916_v47 = vmax.f32 %v712_v42, 0.0  ;;  %v972_v51 = vpack.c.bf16 %v918_v43, %v917_v48  ;;  %v733_v55 = vadd.f32 %v1990_v45, %v2297_v44 }
 0x116   : > { %v724_v49 = vpop.f32.mrf.mxu0 }
 0x117   : > { %v971_v50 = vpack.c.bf16 %v916_v47, %v915_v46  ;;  %v725_v53 = vadd.f32 %v2297_v44, %v724_v49  ;;  %v921_v62 = vmax.f32 %v733_v55, 0.0 }
 0x118   : > { %v1991_v52 = vpop.f32.mrf.mxu0 }
 0x119   : > { %v736_v54 = vadd.f32 %v1991_v52, %v2297_v44  ;;  %2052 = vmatprep.mubr.msk.bf16.mxu1 %vm1018_vm0, %v971_v50  ;;  %v919_v60 = vmax.f32 %v725_v53, 0.0 }
 0x11a   : > { %v727_v56 = vpop.f32.mrf.mxu0  ;;  %2053 = vmatmul.mubr.msk.bf16.gmra.mxu1 %vm1018_vm0, %v972_v51 }
 0x11b   : > { %v728_v57 = vadd.f32 %v2297_v44, %v727_v56  ;;  %v922_v58 = vmax.f32 %v736_v54, 0.0 }
 0x11c   : > { %v1994_v59 = vpop.f32.mrf.mxu0 }
 0x11d   : > { %v920_v61 = vmax.f32 %v728_v57, 0.0  ;;  %v974_v1 = vpack.c.bf16 %v922_v58, %v921_v62  ;;  %v749_v5 = vadd.f32 %v1994_v59, %v2297_v44 }
 0x11e   : > { %v740_v63 = vpop.f32.mrf.mxu0 }
 0x11f   : > { %v973_v0 = vpack.c.bf16 %v920_v61, %v919_v60  ;;  %v741_v3 = vadd.f32 %v2297_v44, %v740_v63  ;;  %v925_v12 = vmax.f32 %v749_v5, 0.0 }
 0x120   : > { %v1995_v2 = vpop.f32.mrf.mxu0 }
 0x121   : > { %v752_v4 = vadd.f32 %v1995_v2, %v2297_v44  ;;  %2056 = vmatprep.mubr.msk.bf16.mxu1 %vm1018_vm0, %v973_v0  ;;  %v923_v10 = vmax.f32 %v741_v3, 0.0 }
 0x122   : > { %v743_v6 = vpop.f32.mrf.mxu0  ;;  %2057 = vmatmul.mubr.msk.bf16.gmra.mxu1 %vm1018_vm0, %v974_v1 }
 0x123   : > { %v744_v7 = vadd.f32 %v2297_v44, %v743_v6  ;;  %v926_v8 = vmax.f32 %v752_v4, 0.0 }
 0x124   : > { %v1998_v9 = vpop.f32.mrf.mxu0 }
 0x125   : > { %v924_v11 = vmax.f32 %v744_v7, 0.0  ;;  %v976_v15 = vpack.c.bf16 %v926_v8, %v925_v12  ;;  %v765_v19 = vadd.f32 %v1998_v9, %v2297_v44 }
 0x126   : > { %v756_v13 = vpop.f32.mrf.mxu0 }
 0x127   : > { %v975_v14 = vpack.c.bf16 %v924_v11, %v923_v10  ;;  %v757_v17 = vadd.f32 %v2297_v44, %v756_v13  ;;  %v929_v26 = vmax.f32 %v765_v19, 0.0 }
 0x128   : > { %v1999_v16 = vpop.f32.mrf.mxu0 }
 0x129   : > { %v768_v18 = vadd.f32 %v1999_v16, %v2297_v44  ;;  %2060 = vmatprep.mubr.msk.bf16.mxu1 %vm1018_vm0, %v975_v14  ;;  %v927_v24 = vmax.f32 %v757_v17, 0.0 }
 0x12a   : > { %v759_v20 = vpop.f32.mrf.mxu0  ;;  %2061 = vmatmul.mubr.msk.bf16.gmra.mxu1 %vm1018_vm0, %v976_v15 }
 0x12b   : > { %v760_v21 = vadd.f32 %v2297_v44, %v759_v20  ;;  %v930_v22 = vmax.f32 %v768_v18, 0.0 }
 0x12c   : > { %v2002_v23 = vpop.f32.mrf.mxu0 }
 0x12d   : > { %v928_v25 = vmax.f32 %v760_v21, 0.0  ;;  %v978_v29 = vpack.c.bf16 %v930_v22, %v929_v26  ;;  %v781_v33 = vadd.f32 %v2002_v23, %v2297_v44 }
 0x12e   : > { %v772_v27 = vpop.f32.mrf.mxu0 }
 0x12f   : > { %v977_v28 = vpack.c.bf16 %v928_v25, %v927_v24  ;;  %v773_v31 = vadd.f32 %v2297_v44, %v772_v27  ;;  %v933_v40 = vmax.f32 %v781_v33, 0.0 }
 0x130   : > { %v2003_v30 = vpop.f32.mrf.mxu0 }
 0x131   : > { %v784_v32 = vadd.f32 %v2003_v30, %v2297_v44  ;;  %2064 = vmatprep.mubr.msk.bf16.mxu1 %vm1018_vm0, %v977_v28  ;;  %v931_v38 = vmax.f32 %v773_v31, 0.0 }
 0x132   : > { %v775_v34 = vpop.f32.mrf.mxu0  ;;  %2065 = vmatmul.mubr.msk.bf16.gmra.mxu1 %vm1018_vm0, %v978_v29 }
 0x133   : > { %v776_v35 = vadd.f32 %v2297_v44, %v775_v34  ;;  %v934_v36 = vmax.f32 %v784_v32, 0.0 }
 0x134   : > { %v2006_v37 = vpop.f32.mrf.mxu0 }
 0x135   : > { %v932_v39 = vmax.f32 %v776_v35, 0.0  ;;  %v980_v43 = vpack.c.bf16 %v934_v36, %v933_v40  ;;  %v797_v48 = vadd.f32 %v2006_v37, %v2297_v44 }
 0x136   : > { %v788_v41 = vpop.f32.mrf.mxu0 }
 0x137   : > { %v979_v42 = vpack.c.bf16 %v932_v39, %v931_v38  ;;  %v789_v46 = vadd.f32 %v2297_v44, %v788_v41  ;;  %v937_v55 = vmax.f32 %v797_v48, 0.0 }
 0x138   : > { %v2007_v45 = vpop.f32.mrf.mxu0 }
 0x139   : > { %v800_v47 = vadd.f32 %v2007_v45, %v2297_v44  ;;  %2068 = vmatprep.mubr.msk.bf16.mxu1 %vm1018_vm0, %v979_v42  ;;  %v935_v53 = vmax.f32 %v789_v46, 0.0 }
 0x13a   : > { %v791_v49 = vpop.f32.mrf.mxu0  ;;  %2069 = vmatmul.mubr.msk.bf16.gmra.mxu1 %vm1018_vm0, %v980_v43 }
 0x13b   : > { %v792_v50 = vadd.f32 %v2297_v44, %v791_v49  ;;  %v938_v51 = vmax.f32 %v800_v47, 0.0 }
 0x13c   : > { %v2010_v52 = vpop.f32.mrf.mxu0 }
 0x13d   : > { %v936_v54 = vmax.f32 %v792_v50, 0.0  ;;  %v982_v58 = vpack.c.bf16 %v938_v51, %v937_v55  ;;  %v813_v62 = vadd.f32 %v2010_v52, %v2297_v44 }
 0x13e   : > { %v804_v56 = vpop.f32.mrf.mxu0 }
 0x13f   : > { %v981_v57 = vpack.c.bf16 %v936_v54, %v935_v53  ;;  %v805_v60 = vadd.f32 %v2297_v44, %v804_v56  ;;  %v941_v5 = vmax.f32 %v813_v62, 0.0 }
 0x140   : > { %v2011_v59 = vpop.f32.mrf.mxu0 }
 0x141   : > { %v816_v61 = vadd.f32 %v2011_v59, %v2297_v44  ;;  %2072 = vmatprep.mubr.msk.bf16.mxu1 %vm1018_vm0, %v981_v57  ;;  %v939_v3 = vmax.f32 %v805_v60, 0.0 }
 0x142   : > { %v807_v63 = vpop.f32.mrf.mxu0  ;;  %2073 = vmatmul.mubr.msk.bf16.gmra.mxu1 %vm1018_vm0, %v982_v58 }
 0x143   : > { %v808_v0 = vadd.f32 %v2297_v44, %v807_v63  ;;  %v942_v1 = vmax.f32 %v816_v61, 0.0 }
 0x144   : > { %v2014_v2 = vpop.f32.mrf.mxu0 }
 0x145   : > { %v940_v4 = vmax.f32 %v808_v0, 0.0  ;;  %v984_v8 = vpack.c.bf16 %v942_v1, %v941_v5  ;;  %v829_v12 = vadd.f32 %v2014_v2, %v2297_v44 }
 0x146   : > { %v820_v6 = vpop.f32.mrf.mxu0 }
 0x147   : > { %v983_v7 = vpack.c.bf16 %v940_v4, %v939_v3  ;;  %v821_v10 = vadd.f32 %v2297_v44, %v820_v6  ;;  %v945_v19 = vmax.f32 %v829_v12, 0.0 }
 0x148   : > { %v2015_v9 = vpop.f32.mrf.mxu0 }
 0x149   : > { %v832_v11 = vadd.f32 %v2015_v9, %v2297_v44  ;;  %2076 = vmatprep.mubr.msk.bf16.mxu1 %vm1018_vm0, %v983_v7  ;;  %v943_v17 = vmax.f32 %v821_v10, 0.0 }
 0x14a   : > { %v823_v13 = vpop.f32.mrf.mxu0  ;;  %2077 = vmatmul.mubr.msk.bf16.gmra.mxu1 %vm1018_vm0, %v984_v8 }
 0x14b   : > { %v824_v14 = vadd.f32 %v2297_v44, %v823_v13  ;;  %v946_v15 = vmax.f32 %v832_v11, 0.0 }
 0x14c   : > { %v2018_v16 = vpop.f32.mrf.mxu0 }
 0x14d   : > { %v944_v18 = vmax.f32 %v824_v14, 0.0  ;;  %v986_v22 = vpack.c.bf16 %v946_v15, %v945_v19  ;;  %v845_v26 = vadd.f32 %v2018_v16, %v2297_v44  ;;  %v2398_v15 = vld [vmem:[%s2608_s4] ss:$0 sm:$0xff] }
 0x14e   : > { %v836_v20 = vpop.f32.mrf.mxu0 }
 0x14f   : > { %v985_v21 = vpack.c.bf16 %v944_v18, %v943_v17  ;;  %v837_v24 = vadd.f32 %v2297_v44, %v836_v20  ;;  %v949_v33 = vmax.f32 %v845_v26, 0.0 }
 0x150   : > { %v2019_v23 = vpop.f32.mrf.mxu0 }
 0x151   : > { %v848_v25 = vadd.f32 %v2019_v23, %v2297_v44  ;;  %2080 = vmatprep.mubr.msk.bf16.mxu1 %vm1018_vm0, %v985_v21  ;;  %v947_v31 = vmax.f32 %v837_v24, 0.0 }
 0x152   : > { %v839_v27 = vpop.f32.mrf.mxu0  ;;  %2081 = vmatmul.mubr.msk.bf16.gmra.mxu1 %vm1018_vm0, %v986_v22 }
 0x153   : > { %v840_v28 = vadd.f32 %v2297_v44, %v839_v27  ;;  %v950_v29 = vmax.f32 %v848_v25, 0.0 }
 0x154   : > { %v2022_v30 = vpop.f32.mrf.mxu0 }
 0x155   : > { %v948_v32 = vmax.f32 %v840_v28, 0.0  ;;  %v988_v36 = vpack.c.bf16 %v950_v29, %v949_v33  ;;  %v861_v40 = vadd.f32 %v2022_v30, %v2297_v44 }
 0x156   : > { %v852_v34 = vpop.f32.mrf.mxu0 }
 0x157   : > { %v987_v35 = vpack.c.bf16 %v948_v32, %v947_v31  ;;  %v853_v38 = vadd.f32 %v2297_v44, %v852_v34  ;;  %v953_v48 = vmax.f32 %v861_v40, 0.0 }
 0x158   : > { %v2023_v37 = vpop.f32.mrf.mxu0 }
 0x159   : > { %v864_v39 = vadd.f32 %v2023_v37, %v2297_v44  ;;  %2084 = vmatprep.mubr.msk.bf16.mxu1 %vm1018_vm0, %v987_v35  ;;  %v951_v46 = vmax.f32 %v853_v38, 0.0 }
 0x15a   : > { %v855_v41 = vpop.f32.mrf.mxu0  ;;  %2085 = vmatmul.mubr.msk.bf16.gmra.mxu1 %vm1018_vm0, %v988_v36 }
 0x15b   : > { %v856_v42 = vadd.f32 %v2297_v44, %v855_v41  ;;  %v954_v43 = vmax.f32 %v864_v39, 0.0 }
 0x15c   : > { %v2026_v45 = vpop.f32.mrf.mxu0 }
 0x15d   : > { %v952_v47 = vmax.f32 %v856_v42, 0.0  ;;  %v990_v51 = vpack.c.bf16 %v954_v43, %v953_v48  ;;  %v877_v55 = vadd.f32 %v2026_v45, %v2297_v44 }
 0x15e   : > { %v868_v49 = vpop.f32.mrf.mxu0 }
 0x15f   : > { %v989_v50 = vpack.c.bf16 %v952_v47, %v951_v46  ;;  %v869_v53 = vadd.f32 %v2297_v44, %v868_v49  ;;  %v957_v62 = vmax.f32 %v877_v55, 0.0 }
 0x160   : > { %v2027_v52 = vpop.f32.mrf.mxu0 }
 0x161   : > { %v880_v54 = vadd.f32 %v2027_v52, %v2297_v44  ;;  %2088 = vmatprep.mubr.msk.bf16.mxu1 %vm1018_vm0, %v989_v50  ;;  %v955_v60 = vmax.f32 %v869_v53, 0.0 }
 0x162   : > { %v871_v56 = vpop.f32.mrf.mxu0  ;;  %2089 = vmatmul.mubr.msk.bf16.gmra.mxu1 %vm1018_vm0, %v990_v51 }
 0x163   : > { %v872_v57 = vadd.f32 %v2297_v44, %v871_v56  ;;  %v958_v58 = vmax.f32 %v880_v54, 0.0 }
 0x164   : > { %v2030_v59 = vpop.f32.mrf.mxu0 }
 0x165   : > { %v956_v61 = vmax.f32 %v872_v57, 0.0  ;;  %v992_v1 = vpack.c.bf16 %v958_v58, %v957_v62  ;;  %v893_v5 = vadd.f32 %v2030_v59, %v2297_v44 }
 0x166   : > { %v884_v63 = vpop.f32.mrf.mxu0 }
 0x167   : > { %v991_v0 = vpack.c.bf16 %v956_v61, %v955_v60  ;;  %v885_v3 = vadd.f32 %v2297_v44, %v884_v63  ;;  %v961_v11 = vmax.f32 %v893_v5, 0.0 }
 0x168   : > { %v2031_v2 = vpop.f32.mrf.mxu0 }
 0x169   : > { %v896_v4 = vadd.f32 %v2031_v2, %v2297_v44  ;;  %2092 = vmatprep.mubr.msk.bf16.mxu1 %vm1018_vm0, %v991_v0  ;;  %v959_v9 = vmax.f32 %v885_v3, 0.0 }
 0x16a   : > { %v887_v6 = vpop.f32.mrf.mxu0  ;;  %2093 = vmatmul.mubr.msk.bf16.gmra.mxu1 %vm1018_vm0, %v992_v1 }
 0x16b   : > { %v888_v7 = vadd.f32 %v2297_v44, %v887_v6  ;;  %v962_v8 = vmax.f32 %v896_v4, 0.0 }
 0x16d   : > { %v960_v10 = vmax.f32 %v888_v7, 0.0  ;;  %v994_v13 = vpack.c.bf16 %v962_v8, %v961_v11 }
 0x16f   : > { %v993_v12 = vpack.c.bf16 %v960_v10, %v959_v9 }
 0x171   : > { %2096 = vmatprep.mubr.msk.bf16.mxu1 %vm1018_vm0, %v993_v12  ;;  %v2447_v12 = vld [vmem:[%s2609_s5] sm:$0xf] }
 0x172   : > { %2097 = vmatmul.mubr.msk.bf16.gmra.mxu1 %vm1018_vm0, %v994_v13  ;;  %1950 = vmatprep.mubr.msk.bf16.mxu0 %vm1507_vm1, %v2447_v12 }
 0x173   : > { %1932 = vmatprep.mubr.msk.bf16.mxu1 %vm1507_vm1, %v2447_v12 }
 0x1ba   : > { %v2038_v14 = vpop.f32.mrf.mxu1 }
 0x1bb   : > { %v1158_v17 = vadd.f32 %v2038_v14, %v2398_v15 }
 0x1bc   : > { %v1149_v16 = vpop.f32.mrf.mxu1 }
 0x1bd   : > { %v1150_v18 = vadd.f32 %v2398_v15, %v1149_v16  ;;  %v1406_v21 = vmax.f32 %v1158_v17, 0.0 }
 0x1be   : > { %v2039_v44 = vpop.f32.mrf.mxu1 }
 0x1bf   : > { %v1161_v19 = vadd.f32 %v2039_v44, %v2398_v15  ;;  %v1404_v25 = vmax.f32 %v1150_v18, 0.0 }
 0x1c0   : > { %v1152_v20 = vpop.f32.mrf.mxu1 }
 0x1c1   : > { %v1407_v22 = vmax.f32 %v1161_v19, 0.0  ;;  %v1153_v23 = vadd.f32 %v2398_v15, %v1152_v20 }
 0x1c2   : > { %v2042_v24 = vpop.f32.mrf.mxu1 }
 0x1c3   : > { %v2404_v26 = vpack.c.bf16 %v1407_v22, %v1406_v21  ;;  %v1405_v27 = vmax.f32 %v1153_v23, 0.0  ;;  %v1174_v30 = vadd.f32 %v2042_v24, %v2398_v15 }
 0x1c4   : > { %v1165_v28 = vpop.f32.mrf.mxu1 }
 0x1c5   : > { %v2406_v29 = vpack.c.bf16 %v1405_v27, %v1404_v25  ;;  %v1166_v32 = vadd.f32 %v2398_v15, %v1165_v28  ;;  %v1410_v35 = vmax.f32 %v1174_v30, 0.0 }
 0x1c6   : > { %v2043_v31 = vpop.f32.mrf.mxu1 }
 0x1c7   : > { %v1177_v33 = vadd.f32 %v2043_v31, %v2398_v15  ;;  %v1408_v39 = vmax.f32 %v1166_v32, 0.0 }
 0x1c8   : > { %v1168_v34 = vpop.f32.mrf.mxu1 }
 0x1c9   : > { %v1411_v36 = vmax.f32 %v1177_v33, 0.0  ;;  %v1169_v37 = vadd.f32 %v2398_v15, %v1168_v34 }
 0x1ca   : > { %v2412_v38 = vpop.f32.mrf.mxu1 }
 0x1cb   : > { %v2414_v40 = vpack.c.bf16 %v1411_v36, %v1410_v35  ;;  %v1409_v41 = vmax.f32 %v1169_v37, 0.0 }
 0x1cc   : > { %v2416_v42 = vpop.f32.mrf.mxu1 }
 0x1cd   : > { %v2418_v43 = vpack.c.bf16 %v1409_v41, %v1408_v39  ;;  %v1501_v41 = vld [vmem:[%s2610_s6] sm:$0xff] }
 0x1ce   : > { %v2420_v45 = vpop.f32.mrf.mxu1 }
 0x1d0   : > { %v2422_v46 = vpop.f32.mrf.mxu1 }
 0x1d2   : > { %v2050_v47 = vpop.f32.mrf.mxu1 }
 0x1d3   : > { %v1206_v10 = vadd.f32 %v2050_v47, %v2398_v15 }
 0x1d4   : > { %v1197_v48 = vpop.f32.mrf.mxu1 }
 0x1d5   : > { %v1418_v17 = vmax.f32 %v1206_v10, 0.0  ;;  %v1198_v27 = vadd.f32 %v2398_v15, %v1197_v48 }
 0x1d6   : > { %v2051_v49 = vpop.f32.mrf.mxu1 }
 0x1d7   : > { %v1209_v8 = vadd.f32 %v2051_v49, %v2398_v15  ;;  %v1416_v47 = vmax.f32 %v1198_v27, 0.0  ;;  %v2176_v49 = vmov 0  }
 0x1d8   : > { %v1200_v50 = vpop.f32.mrf.mxu1  ;;  %2125 = vset.pattern.permute.xlu0 %v2176_v49 }
 0x1d9   : > { %v1419_v13 = vmax.f32 %v1209_v8, 0.0  ;;  %v1201_v21 = vadd.f32 %v2398_v15, %v1200_v50  ;;  %1504 = vperm.xlu0 %2125, %v1501_v41  }
 0x1da   : > { %v2054_v51 = vpop.f32.mrf.mxu1 }
 0x1db   : > { %v1222_v53 = vadd.f32 %v2054_v51, %v2398_v15  ;;  %v1476_v20 = vpack.c.bf16 %v1419_v13, %v1418_v17  ;;  %v1417_v33 = vmax.f32 %v1201_v21, 0.0 }
 0x1dc   : > { %v1213_v52 = vpop.f32.mrf.mxu1 }
 0x1dd   : > { %v1214_v55 = vadd.f32 %v2398_v15, %v1213_v52  ;;  %v1422_v58 = vmax.f32 %v1222_v53, 0.0  ;;  %v1533_v35 = vsel %vm1507_vm1, %v1476_v20, 0  ;;  %v1193_v53 = vadd.f32 %v2420_v45, %v2398_v15 }
 0x1de   : > { %v2055_v54 = vpop.f32.mrf.mxu1 }
 0x1df   : > { %v1225_v56 = vadd.f32 %v2055_v54, %v2398_v15  ;;  %v1420_v62 = vmax.f32 %v1214_v55, 0.0  ;;  %v1475_v54 = vpack.c.bf16 %v1417_v33, %v1416_v47  ;;  %v1415_v10 = vmax.f32 %v1193_v53, 0.0 }
 0x1e0   : > { %v1216_v57 = vpop.f32.mrf.mxu1 }
 0x1e1   : > { %v1423_v59 = vmax.f32 %v1225_v56, 0.0  ;;  %v1217_v60 = vadd.f32 %v2398_v15, %v1216_v57  ;;  %v1530_v45 = vsel %vm1507_vm1, %v1475_v54, 0 }
 0x1e2   : > { %v2428_v61 = vpop.f32.mrf.mxu1 }
 0x1e3   : > { %v2430_v63 = vpack.c.bf16 %v1423_v59, %v1422_v58  ;;  %v1421_v0 = vmax.f32 %v1217_v60, 0.0  ;;  %v1190_v60 = vadd.f32 %v2412_v38, %v2398_v15  ;;  %v1238_v47 = vadd.f32 %v2428_v61, %v2398_v15 }
 0x1e4   : > { %v2432_v1 = vpop.f32.mrf.mxu1 }
 0x1e5   : > { %v2434_v2 = vpack.c.bf16 %v1421_v0, %v1420_v62  ;;  %v1230_v61 = vadd.f32 %v2398_v15, %v2432_v1 }
 0x1e6   : > { %v2436_v3 = vpop.f32.mrf.mxu1 }
 0x1e8   : > { %v2438_v4 = vpop.f32.mrf.mxu1 }
 0x1e9   : > { %v1233_v54 = vadd.f32 %v2398_v15, %v2438_v4  ;;  %v1521_v4 = vsel %vm1507_vm1, %v2414_v40, 0 }
 0x1ea   : > { %v2062_v5 = vpop.f32.mrf.mxu1 }
 0x1eb   : > { %v1254_v50 = vadd.f32 %v2062_v5, %v2398_v15 }
 0x1ec   : > { %v2440_v6 = vpop.f32.mrf.mxu1 }
 0x1ed   : > { %v1430_v0 = vmax.f32 %v1254_v50, 0.0  ;;  %v1246_v38 = vadd.f32 %v2398_v15, %v2440_v6 }
 0x1ee   : > { %v2063_v7 = vpop.f32.mrf.mxu1 }
 0x1ef   : > { %v1257_v36 = vadd.f32 %v2063_v7, %v2398_v15 }
 0x1f0   : > { %v1248_v9 = vpop.f32.mrf.mxu1 }
 0x1f1   : > { %v1431_v56 = vmax.f32 %v1257_v36, 0.0 }
 0x1f2   : > { %v2066_v11 = vpop.f32.mrf.mxu1 }
 0x1f3   : > { %v1270_v16 = vadd.f32 %v2066_v11, %v2398_v15  ;;  %v1482_v13 = vpack.c.bf16 %v1431_v56, %v1430_v0 }
 0x1f4   : > { %v1261_v14 = vpop.f32.mrf.mxu1 }
 0x1f5   : > { %v1262_v18 = vadd.f32 %v2398_v15, %v1261_v14  ;;  %v1434_v23 = vmax.f32 %v1270_v16, 0.0  ;;  %v1249_v14 = vadd.f32 %v2398_v15, %v1248_v9  ;;  %v1185_v9 = vadd.f32 %v2398_v15, %v2422_v46 }
 0x1f6   : > { %v2067_v44 = vpop.f32.mrf.mxu1  ;;  %v1241_v46 = vadd.f32 %v2436_v3, %v2398_v15  ;;  %v1426_v3 = vmax.f32 %v1238_v47, 0.0 }
 0x1f7   : > { %v1273_v19 = vadd.f32 %v2067_v44, %v2398_v15  ;;  %v1432_v30 = vmax.f32 %v1262_v18, 0.0  ;;  %v1414_v44 = vmax.f32 %v1190_v60, 0.0  ;;  %v1424_v60 = vmax.f32 %v1230_v61, 0.0 }
 0x1f8   : > { %v1264_v22 = vpop.f32.mrf.mxu1  ;;  %v1427_v50 = vmax.f32 %v1241_v46, 0.0 }
 0x1f9   : > { %v1435_v24 = vmax.f32 %v1273_v19, 0.0  ;;  %v1265_v25 = vadd.f32 %v2398_v15, %v1264_v22  ;;  %v1474_v21 = vpack.c.bf16 %v1415_v10, %v1414_v44 }
 0x1fa   : > { %v2070_v28 = vpop.f32.mrf.mxu1  ;;  %v1480_v53 = vpack.c.bf16 %v1427_v50, %v1426_v3 }
 0x1fb   : > { %v1484_v31 = vpack.c.bf16 %v1435_v24, %v1434_v23  ;;  %v1433_v32 = vmax.f32 %v1265_v25, 0.0  ;;  %v1286_v39 = vadd.f32 %v2070_v28, %v2398_v15  ;;  %v1429_v23 = vmax.f32 %v1249_v14, 0.0 }
 0x1fc   : > { %v1277_v34 = vpop.f32.mrf.mxu1  ;;  %v1182_v28 = vadd.f32 %v2398_v15, %v2416_v42 }
 0x1fd   : > { %v1483_v37 = vpack.c.bf16 %v1433_v32, %v1432_v30  ;;  %2100 = vmatprep.subr.msk.bf16.mxu1 %vm1507_vm1, %v1484_v31  ;;  %v1278_v51 = vadd.f32 %v2398_v15, %v1277_v34  ;;  %v1438_v57 = vmax.f32 %v1286_v39, 0.0  ;;  %v1428_v30 = vmax.f32 %v1246_v38, 0.0 }
 0x1fe   : > { %v2071_v48 = vpop.f32.mrf.mxu1  ;;  %1917 = vmatpush3.bf16.xpose.msra.mxu1 %v1533_v35  ;;  %v1413_v34 = vmax.f32 %v1185_v9, 0.0  ;;  %v1527_v39 = vsel %vm1507_vm1, %v1474_v21, 0  ;;  %v1412_v42 = vmax.f32 %v1182_v28, 0.0 }
 0x1ff   : > { %v1289_v52 = vadd.f32 %v2071_v48, %v2398_v15  ;;  %2101 = vmatprep.subr.msk.bf16.mxu1 %vm1507_vm1, %v1483_v37  ;;  %v1436_v5 = vmax.f32 %v1278_v51, 0.0  ;;  %v1481_v36 = vpack.c.bf16 %v1429_v23, %v1428_v30 }
 0x200   : > { %v1280_v55 = vpop.f32.mrf.mxu1  ;;  %v1473_v49 = vpack.c.bf16 %v1413_v34, %v1412_v42  ;;  %v1512_v34 = vsel %vm1507_vm1, %v2406_v29, 0 }
 0x201   : > { %v1439_v58 = vmax.f32 %v1289_v52, 0.0  ;;  %v1281_v59 = vadd.f32 %v2398_v15, %v1280_v55 }
 0x202   : > { %v2074_v62 = vpop.f32.mrf.mxu1  ;;  %v1524_v55 = vsel %vm1507_vm1, %v1473_v49, 0 }
 0x203   : > { %v2475_v7 = vpack.c.bf16 %v1439_v58, %v1438_v57  ;;  %v1437_v8 = vmax.f32 %v1281_v59, 0.0  ;;  %v1302_v17 = vadd.f32 %v2074_v62, %v2398_v15  ;;  %v1425_v58 = vmax.f32 %v1233_v54, 0.0 }
 0x204   : > { %v1293_v11 = vpop.f32.mrf.mxu1 }
 0x205   : > { %v2479_v16 = vpack.c.bf16 %v1437_v8, %v1436_v5  ;;  %v1294_v19 = vadd.f32 %v2398_v15, %v1293_v11  ;;  %v1442_v24 = vmax.f32 %v1302_v17, 0.0  ;;  %v1479_v0 = vpack.c.bf16 %v1425_v58, %v1424_v60 }
 0x206   : > { %v2075_v18 = vpop.f32.mrf.mxu1  ;;  %1919 = vmatpush3.bf16.xpose.msra.mxu1 %v1530_v45 }
 0x207   : > { %v1305_v20 = vadd.f32 %v2075_v18, %v2398_v15  ;;  %2102 = vmatprep.subr.msk.bf16.mxu1 %vm1507_vm1, %v1482_v13  ;;  %v1440_v31 = vmax.f32 %v1294_v19, 0.0 }
 0x208   : > { %v1296_v22 = vpop.f32.mrf.mxu1 }
 0x209   : > { %v1443_v25 = vmax.f32 %v1305_v20, 0.0  ;;  %v1297_v27 = vadd.f32 %v2398_v15, %v1296_v22  ;;  %v1518_v20 = vsel %vm1507_vm1, %v2418_v43, 0 }
 0x20a   : > { %v2492_v6 = vpop.f32.mrf.mxu1 }
 0x20b   : > { %v2494_v32 = vpack.c.bf16 %v1443_v25, %v1442_v24  ;;  %v1441_v33 = vmax.f32 %v1297_v27, 0.0  ;;  %v1515_v24 = vsel %vm1507_vm1, %v2404_v26, 0 }
 0x20c   : > { %v2496_v35 = vpop.f32.mrf.mxu1 }
 0x20d   : > { %v2500_v37 = vpack.c.bf16 %v1441_v33, %v1440_v31 }
 0x20e   : > { %v2503_v41 = vpop.f32.mrf.mxu1  ;;  %1921 = vmatpush3.bf16.xpose.msra.mxu1 %v1527_v39 }
 0x20f   : > { %2103 = vmatprep.subr.msk.bf16.mxu1 %vm1507_vm1, %v1481_v36 }
 0x210   : > { %v2508_v48 = vpop.f32.mrf.mxu1 }
 0x212   : > { %v2082_v51 = vpop.f32.mrf.mxu1 }
 0x213   : > { %v1334_v30 = vadd.f32 %v2082_v51, %v2398_v15 }
 0x214   : > { %v1325_v52 = vpop.f32.mrf.mxu1 }
 0x215   : > { %v1450_v26 = vmax.f32 %v1334_v30, 0.0  ;;  %v1326_v3 = vadd.f32 %v2398_v15, %v1325_v52  ;;  %v1321_v52 = vadd.f32 %v2503_v41, %v2398_v15  ;;  %v1313_v41 = vadd.f32 %v2398_v15, %v2508_v48 }
 0x216   : > { %v2083_v56 = vpop.f32.mrf.mxu1  ;;  %1923 = vmatpush3.bf16.xpose.msra.mxu1 %v1524_v55 }
 0x217   : > { %2104 = vmatprep.subr.msk.bf16.mxu1 %vm1507_vm1, %v1480_v53  ;;  %v1337_v43 = vadd.f32 %v2083_v56, %v2398_v15 }
 0x218   : > { %v1328_v57 = vpop.f32.mrf.mxu1 }
 0x219   : > { %v1329_v39 = vadd.f32 %v2398_v15, %v1328_v57  ;;  %v1448_v57 = vmax.f32 %v1326_v3, 0.0 }
 0x21a   : > { %v2086_v59 = vpop.f32.mrf.mxu1 }
 0x21b   : > { %v1350_v5 = vadd.f32 %v2086_v59, %v2398_v15  ;;  %v1449_v55 = vmax.f32 %v1329_v39, 0.0 }
 0x21c   : > { %v1341_v62 = vpop.f32.mrf.mxu1 }
 0x21d   : > { %v1342_v10 = vadd.f32 %v2398_v15, %v1341_v62  ;;  %v1454_v45 = vmax.f32 %v1350_v5, 0.0  ;;  %v1491_v60 = vpack.c.bf16 %v1449_v55, %v1448_v57 }
 0x21e   : > { %v2087_v8 = vpop.f32.mrf.mxu1  ;;  %1925 = vmatpush3.bf16.xpose.msra.mxu1 %v1521_v4  ;;  %v1447_v4 = vmax.f32 %v1321_v52, 0.0 }
 0x21f   : > { %v1353_v11 = vadd.f32 %v2087_v8, %v2398_v15  ;;  %2105 = vmatprep.subr.msk.bf16.mxu1 %vm1507_vm1, %v1479_v0  ;;  %v1452_v44 = vmax.f32 %v1342_v10, 0.0  ;;  %v1318_v0 = vadd.f32 %v2492_v6, %v2398_v15  ;;  %v1310_v6 = vadd.f32 %v2398_v15, %v2496_v35 }
 0x220   : > { %v1344_v1 = vpop.f32.mrf.mxu1 }
 0x221   : > { %v1455_v13 = vmax.f32 %v1353_v11, 0.0  ;;  %v1345_v14 = vadd.f32 %v2398_v15, %v1344_v1  ;;  %v1578_v11 = vsel %vm1507_vm1, %v1491_v60, 0  ;;  %v1446_v1 = vmax.f32 %v1318_v0, 0.0 }
 0x222   : > { %v2523_v17 = vpop.f32.mrf.mxu1 }
 0x223   : > { %v2525_v18 = vpack.c.bf16 %v1455_v13, %v1454_v45  ;;  %v1453_v38 = vmax.f32 %v1345_v14, 0.0  ;;  %v1490_v13 = vpack.c.bf16 %v1447_v4, %v1446_v1 }
 0x224   : > { %v2527_v40 = vpop.f32.mrf.mxu1 }
 0x225   : > { %v2529_v19 = vpack.c.bf16 %v1453_v38, %v1452_v44  ;;  %v1445_v38 = vmax.f32 %v1313_v41, 0.0 }
 0x226   : > { %v2091_v21 = vpop.f32.mrf.mxu1  ;;  %1927 = vmatpush3.bf16.xpose.msra.mxu1 %v1518_v20 }
 0x227   : > { %2106 = vmatprep.subr.msk.bf16.mxu1 %vm1507_vm1, %v2430_v63  ;;  %v1451_v63 = vmax.f32 %v1337_v43, 0.0  ;;  %v1369_v20 = vadd.f32 %v2091_v21, %v2398_v15  ;;  %v1358_v21 = vadd.f32 %v2398_v15, %v2527_v40 }
 0x228   : > { %v2535_v9 = vpop.f32.mrf.mxu1 }
 0x229   : > { %v1492_v47 = vpack.c.bf16 %v1451_v63, %v1450_v26  ;;  %v1459_v48 = vmax.f32 %v1369_v20, 0.0  ;;  %v1361_v35 = vadd.f32 %v2398_v15, %v2535_v9  ;;  %v1566_v9 = vsel %vm1507_vm1, %v2500_v37, 0 }
 0x22a   : > { %v2094_v22 = vpop.f32.mrf.mxu1 }
 0x22b   : > { %v1581_v58 = vsel %vm1507_vm1, %v1492_v47, 0  ;;  %v1382_v59 = vadd.f32 %v2094_v22, %v2398_v15 }
 0x22c   : > { %v1373_v23 = vpop.f32.mrf.mxu1 }
 0x22d   : > { %v1462_v5 = vmax.f32 %v1382_v59, 0.0  ;;  %v1374_v45 = vadd.f32 %v2398_v15, %v1373_v23  ;;  %v1366_v23 = vadd.f32 %v2523_v17, %v2398_v15  ;;  %v1456_v17 = vmax.f32 %v1358_v21, 0.0 }
 0x22e   : > { %v2095_v25 = vpop.f32.mrf.mxu1  ;;  %1929 = vmatpush3.bf16.xpose.msra.mxu1 %v1515_v24  ;;  %v1575_v24 = vsel %vm1507_vm1, %v1490_v13, 0 }
 0x22f   : > { %2107 = vmatprep.subr.msk.bf16.mxu1 %vm1507_vm1, %v2434_v2  ;;  %v1385_v56 = vadd.f32 %v2095_v25, %v2398_v15  ;;  %v1460_v44 = vmax.f32 %v1374_v45, 0.0  ;;  %v1444_v25 = vmax.f32 %v1310_v6, 0.0  ;;  %v1458_v43 = vmax.f32 %v1366_v23, 0.0 }
 0x230   : > { %v1376_v27 = vpop.f32.mrf.mxu1 }
 0x231   : > { %v1463_v62 = vmax.f32 %v1385_v56, 0.0  ;;  %v1377_v10 = vadd.f32 %v2398_v15, %v1376_v27  ;;  %v1489_v27 = vpack.c.bf16 %v1445_v38, %v1444_v25 }
 0x232   : > { %v2098_v28 = vpop.f32.mrf.mxu1 }
 0x233   : > { %v1398_v33 = vadd.f32 %v2098_v28, %v2398_v15  ;;  %v1498_v8 = vpack.c.bf16 %v1463_v62, %v1462_v5  ;;  %v1461_v14 = vmax.f32 %v1377_v10, 0.0  ;;  %v1496_v28 = vpack.c.bf16 %v1459_v48, %v1458_v43 }
 0x234   : > { %v1389_v31 = vpop.f32.mrf.mxu1  ;;  %v1572_v30 = vsel %vm1507_vm1, %v1489_v27, 0 }
 0x235   : > { %v1390_v36 = vadd.f32 %v2398_v15, %v1389_v31  ;;  %v1466_v49 = vmax.f32 %v1398_v33, 0.0  ;;  %v1497_v22 = vpack.c.bf16 %v1461_v14, %v1460_v44  ;;  %v1457_v31 = vmax.f32 %v1361_v35, 0.0 }
 0x236   : > { %v2099_v46 = vpop.f32.mrf.mxu1  ;;  %1931 = vmatpush3.bf16.xpose.msra.mxu1 %v1512_v34  ;;  %v1569_v33 = vsel %vm1507_vm1, %v2494_v32, 0  ;;  %v1560_v32 = vsel %vm1507_vm1, %v2479_v16, 0 }
 0x237   : > { %v1401_v2 = vadd.f32 %v2099_v46, %v2398_v15  ;;  %v1464_v53 = vmax.f32 %v1390_v36, 0.0  ;;  %v1495_v63 = vpack.c.bf16 %v1457_v31, %v1456_v17 }
 0x238   : > { %v1392_v42 = vpop.f32.mrf.mxu1 }
 0x239   : > { %v1467_v50 = vmax.f32 %v1401_v2, 0.0  ;;  %v1393_v51 = vadd.f32 %v2398_v15, %v1392_v42  ;;  %v1563_v15 = vsel %vm1507_vm1, %v2475_v7, 0 }
 0x23b   : > { %v1500_v54 = vpack.c.bf16 %v1467_v50, %v1466_v49  ;;  %v1465_v29 = vmax.f32 %v1393_v51, 0.0 }
 0x23d   : > { %v1499_v61 = vpack.c.bf16 %v1465_v29, %v1464_v53  ;;  %2108 = vmatprep.subr.msk.bf16.mxu0 %vm1507_vm1, %v1500_v54  ;;  %1933 = vmatmul.mubr.msk.bf16.vlgmr.msra.gmra.mxu1 %vm1507_vm1, %v2447_v12 }
 0x23e   : > { %1935 = vmatpush3.bf16.xpose.msra.mxu0 %v1581_v58 }
 0x23f   : > { %2109 = vmatprep.subr.msk.bf16.mxu0 %vm1507_vm1, %v1499_v61 }
 0x246   : > { %1937 = vmatpush3.bf16.xpose.msra.mxu0 %v1578_v11 }
 0x247   : > { %2110 = vmatprep.subr.msk.bf16.mxu0 %vm1507_vm1, %v1498_v8 }
 0x24e   : > { %1939 = vmatpush3.bf16.xpose.msra.mxu0 %v1575_v24 }
 0x24f   : > { %2111 = vmatprep.subr.msk.bf16.mxu0 %vm1507_vm1, %v1497_v22 }
 0x254   : > { %v1505_v37 = vpop.permute.xlu0 %1504 }
 0x256   : > { %1941 = vmatpush3.bf16.xpose.msra.mxu0 %v1572_v30 }
 0x257   : > { %2112 = vmatprep.subr.msk.bf16.mxu0 %vm1507_vm1, %v1496_v28 }
 0x25e   : > { %1943 = vmatpush3.bf16.xpose.msra.mxu0 %v1569_v33 }
 0x25f   : > { %2113 = vmatprep.subr.msk.bf16.mxu0 %vm1507_vm1, %v1495_v63 }
 0x266   : > { %1945 = vmatpush3.bf16.xpose.msra.mxu0 %v1566_v9 }
 0x267   : > { %2114 = vmatprep.subr.msk.bf16.mxu0 %vm1507_vm1, %v2525_v18 }
 0x26e   : > { %1947 = vmatpush3.bf16.xpose.msra.mxu0 %v1563_v15 }
 0x26f   : > { %2115 = vmatprep.subr.msk.bf16.mxu0 %vm1507_vm1, %v2529_v19 }
 0x276   : > { %1949 = vmatpush3.bf16.xpose.msra.mxu0 %v1560_v32 }
 0x27d   : > { %1951 = vmatmul.mubr.msk.bf16.vlgmr.msra.gmra.mxu0 %vm1507_vm1, %v2447_v12 }
 0x2fd   : > { %v1641_v18 = vpop.f32.mrf.mxu1 }
 0x2fe   : > { %v1642_v40 = vadd.f32 %v1641_v18, %v1505_v37 }
 0x2ff   : > { %v1643_v7 = vpop.f32.mrf.mxu1 }
 0x300   : > { %v1644_v19 = vadd.f32 %v1643_v7, %v1505_v37  ;;  %v1689_v34 = vmax.f32 %v1642_v40, 0.0 }
 0x301   : > { %v1645_v16 = vpop.f32.mrf.mxu1 }
 0x302   : > { %v1690_v46 = vmax.f32 %v1644_v19, 0.0  ;;  %1693 = vst [vmem:[%s280_s19] sm:$0xff] %v1689_v34 }
 0x303   : > { %v1646_v26 = vpop.f32.mrf.mxu1 }
 0x304   : > { %1694 = vst [vmem:[%s280_s19 + $0x8] sm:$0xff] %v1690_v46 }
 0x33d   : > { %v1682_v12 = vpop.f32.mrf.mxu0 }
 0x33e   : > { %v1683_v36 = vadd.f32 %v1682_v12, %v1505_v37 }
 0x33f   : > { %v1684_v2 = vpop.f32.mrf.mxu0 }
 0x340   : > { %v1691_v39 = vmax.f32 %v1683_v36, 0.0  ;;  %v1685_v42 = vadd.f32 %v1684_v2, %v1505_v37 }
 0x341   : > { %v1686_v47 = vpop.f32.mrf.mxu0 }
 0x342   : > { %1695 = vst [vmem:[%s280_s19 + $0x10] sm:$0xff] %v1691_v39  ;;  %v1692_v49 = vmax.f32 %v1685_v42, 0.0 }
 0x343   : > { %v1687_v50 = vpop.f32.mrf.mxu0 }
 0x344   : > { %1696 = vst [vmem:[%s280_s19 + $0x18] sm:$0xff] %v1692_v49 }
 0x345 PF: > { %s17_s24 = sadd.s32 1, %s2174_s24  }
 0x346   : > { %p14_p5 = scmp.ge.s32.totalorder %s17_s24, 4  }
 0x348   :  { %16 = sbr.rel (!%p14_p5) target bundleno = 1 (0x1), region = 78 }

</bundles_post_ra>
